<compile_context>
chip_gen: v5e
topology: v5e:2x2
jax: 0.10.0
libtpu: 0.0.40
codegen_flags: <defaults>
</compile_context>

<pallas_src>
import functools

import jax
import jax.numpy as jnp
from jax.experimental import pallas as pl
from jax.experimental.pallas import tpu as pltpu


# TODO(synk): on v7x, verify with a trace that the batch axis actually splits across
# the two TensorCores; if not, switch this axis to pltpu.CORE_PARALLEL.
_COMPILER_PARAMS = pltpu.CompilerParams(
    dimension_semantics=("parallel", "arbitrary"),
    vmem_limit_bytes=48 * 1024 * 1024,   # headroom under v7x's 64 MiB physical VMEM
)


# --------------------------------------------------------------------------------------
# NCC similarity loss
# --------------------------------------------------------------------------------------
def _ncc_kernel(x_ref, y_ref, out_ref, acc_ref,
                *, nr, tr, ch, ln, n_total, eps, needs_mask):
    k = pl.program_id(1)

    @pl.when(k == 0)
    def _init():
        acc_ref[...] = jnp.zeros_like(acc_ref)

    n_chunks = tr // ch

    def body(c, carry):
        sa, sb, saa, sbb, sab = carry
        r0 = pl.multiple_of(c * ch, ch)
        xs = x_ref[0, pl.ds(r0, ch), :].astype(jnp.float32)     # (ch, ln)
        ys = y_ref[0, pl.ds(r0, ch), :].astype(jnp.float32)
        if needs_mask:   # only emitted in the rare no-aligned-divisor fallback
            rows = jax.lax.broadcasted_iota(jnp.int32, (ch, ln), 0) + k * tr + r0
            valid = rows < nr
            xs = jnp.where(valid, xs, 0.0)
            ys = jnp.where(valid, ys, 0.0)
        # Raw sufficient statistics: the final num/var formulas remove the mean, so
        # no per-element centering subtractions are needed in the hot loop.
        sa = sa + jnp.sum(xs, axis=0, keepdims=True)
        sb = sb + jnp.sum(ys, axis=0, keepdims=True)
        saa = saa + jnp.sum(xs * xs, axis=0, keepdims=True)
        sbb = sbb + jnp.sum(ys * ys, axis=0, keepdims=True)
        sab = sab + jnp.sum(xs * ys, axis=0, keepdims=True)
        return (sa, sb, saa, sbb, sab)

    zeros = jnp.zeros((1, ln), jnp.float32)
    sa, sb, saa, sbb, sab = jax.lax.fori_loop(
        0, n_chunks, body, (zeros, zeros, zeros, zeros, zeros))

    acc_ref[0] += sa
    acc_ref[1] += sb
    acc_ref[2] += saa
    acc_ref[3] += sbb
    acc_ref[4] += sab

    @pl.when(k == pl.num_programs(1) - 1)
    def _fin():
        n = jnp.float32(n_total)
        SA = jnp.sum(acc_ref[0], axis=(0, 1), keepdims=True)
        SB = jnp.sum(acc_ref[1], axis=(0, 1), keepdims=True)
        SAA = jnp.sum(acc_ref[2], axis=(0, 1), keepdims=True)
        SBB = jnp.sum(acc_ref[3], axis=(0, 1), keepdims=True)
        SAB = jnp.sum(acc_ref[4], axis=(0, 1), keepdims=True)
        num = SAB - SA * SB / n
        varx = SAA - SA * SA / n
        vary = SBB - SB * SB / n
        ncc = num / jnp.sqrt(varx * vary + eps)          # eps inside sqrt, as torch
        out_ref[...] = jnp.broadcast_to(ncc.reshape(1, 1, 1), (1, 1, 128))


def _pick_ncc_rows(nr, requested):
    """Rows per NCC block.  Prefer a divisor of nr (no remainder mask in hot path)."""
    if requested is not None:
        tr = min(int(requested), nr)
        if tr == nr:
            return tr, False
        tr = max(8, (tr // 8) * 8)
        return tr, (nr % tr) != 0
    target = 4096                     # 4096 x 128 x 4 B = 2 MiB/block; 2 in x 2 buf = 8 MiB
    if nr <= target:
        return nr, False
    for cand in range(target, 7, -8):             # largest mult-of-8 divisor <= target
        if nr % cand == 0:
            return cand, False
    # TODO(synk): no aligned divisor of nr -- masked ragged last tile (rare).
    return target, True


def _pick_chunk(tr, cap=256):
    """Sub-chunk rows for the in-block fori_loop (must divide tr)."""
    divs = [d for d in range(1, min(tr, cap) + 1) if tr % d == 0]
    mult8 = [d for d in divs if d % 8 == 0]
    return mult8[-1] if mult8 else divs[-1]


def ncc_loss_pallas(x, y, eps=1e-8, rows_per_step=None):
    """-mean_{b,c} NCC(x[b,c], y[b,c]) over the spatial dims, as a tiled Pallas kernel."""
    assert x.shape == y.shape and x.ndim == 5
    B, C, D, H, W = x.shape
    BN = B * C
    N = D * H * W
    ln = 128
    if N % 128 == 0:
        nr = N // 128
        x3 = x.reshape(BN, nr, ln)                # free reshape, native dtype streamed
        y3 = y.reshape(BN, nr, ln)
    else:
        # TODO(synk): zero-pad to a 128 multiple (one extra HBM copy).  Zeros contribute
        # nothing to the raw sums, and n_total below stays the true voxel count.
        pad = (-N) % 128
        nr = (N + pad) // 128
        x3 = jnp.pad(x.reshape(BN, N), ((0, 0), (0, pad))).reshape(BN, nr, ln)
        y3 = jnp.pad(y.reshape(BN, N), ((0, 0), (0, pad))).reshape(BN, nr, ln)

    tr, needs_mask = _pick_ncc_rows(nr, rows_per_step)
    ch = _pick_chunk(tr)
    kt = pl.cdiv(nr, tr)

    ncc = pl.pallas_call(
        functools.partial(_ncc_kernel, nr=nr, tr=tr, ch=ch, ln=ln, n_total=N,
                          eps=eps, needs_mask=needs_mask),
        out_shape=jax.ShapeDtypeStruct((BN, 1, 128), jnp.float32),
        grid=(BN, kt),
        in_specs=[pl.BlockSpec((1, tr, ln), lambda b, k: (b, k, 0)),
                  pl.BlockSpec((1, tr, ln), lambda b, k: (b, k, 0))],
        out_specs=pl.BlockSpec((1, 1, 128), lambda b, k: (b, 0, 0)),
        scratch_shapes=[pltpu.VMEM((5, 1, ln), jnp.float32)],   # sufficient statistics
        compiler_params=_COMPILER_PARAMS,
    )(x3, y3)

    return -jnp.mean(ncc[:, 0, 0])


# --------------------------------------------------------------------------------------
# Total-variation regularizer
# --------------------------------------------------------------------------------------
def _tv_kernel(d_ref, out_ref, accz_ref, accy_ref, accx_ref, carry_ref, *, td, hw, w):
    k = pl.program_id(1)
    x = d_ref[0].astype(jnp.float32)                     # (td, hw)

    @pl.when(k == 0)
    def _init():
        accz_ref[...] = jnp.zeros_like(accz_ref)
        accy_ref[...] = jnp.zeros_like(accy_ref)
        accx_ref[...] = jnp.zeros_like(accx_ref)

    # --- dz: finite difference along D (sublane axis of this block) ---
    if td > 1:
        dz = jnp.abs(x[1:, :] - x[:-1, :])               # (td-1, hw)
        accz_ref[...] += jnp.sum(dz, axis=0, keepdims=True)

    # cross-tile dz term: last row of the previous D-tile carried in VMEM
    @pl.when(k > 0)
    def _cross():
        accz_ref[...] += jnp.abs(x[0:1, :] - carry_ref[...])
    carry_ref[...] = x[td - 1:td, :]

    # --- dy: lane shift by W via XLU roll; wrapped lanes zeroed at finalize ---
    # roll(x, hw - w)[i] == x[(i + w) mod hw]
    xw = pltpu.roll(x, hw - w, axis=1)
    accy_ref[...] += jnp.sum(jnp.abs(xw - x), axis=0, keepdims=True)

    # --- dx: lane shift by 1 via XLU roll; row-crossing lanes zeroed at finalize ---
    x1 = pltpu.roll(x, hw - 1, axis=1)
    accx_ref[...] += jnp.sum(jnp.abs(x1 - x), axis=0, keepdims=True)

    @pl.when(k == pl.num_programs(1) - 1)
    def _fin():
        # Validity masks applied once per volume-group (not per tile).
        lane = jax.lax.broadcasted_iota(jnp.int32, (1, hw), 1)
        my = (lane < (hw - w)).astype(jnp.float32)           # dy: drop wrapped lanes
        mx = ((lane % w) != (w - 1)).astype(jnp.float32)     # dx: drop row-crossing lanes
        sz = jnp.sum(accz_ref[...], axis=(0, 1), keepdims=True).reshape(1, 1, 1)
        sy = jnp.sum(accy_ref[...] * my, axis=(0, 1), keepdims=True).reshape(1, 1, 1)
        sx = jnp.sum(accx_ref[...] * mx, axis=(0, 1), keepdims=True).reshape(1, 1, 1)
        lane3 = jax.lax.broadcasted_iota(jnp.int32, (1, 1, 128), 2)
        out_ref[...] = jnp.where(lane3 == 0, sz,
                                 jnp.where(lane3 == 1, sy,
                                           jnp.where(lane3 == 2, sx, 0.0)))


def _pick_tv_rows(D, hw, requested):
    if requested is not None:
        td = int(requested)
        assert td == D or (D % td == 0 and td % 8 == 0), "tv tile must divide D (mult of 8)"
        return td
    cap_bytes = 4 << 20                                  # ~4 MiB f32 block
    if D * hw * 4 <= cap_bytes:
        return D                                         # whole depth in one block
    best = None
    for cand in range(8, min(D, 256) + 1, 8):
        if D % cand == 0 and cand * hw * 4 <= cap_bytes:
            best = cand
    if best is None:
        best = D   # TODO(synk): no suitable mult-of-8 divisor of D -- whole-D blocks
    return best


def tv_loss_pallas(displace, d_per_step=None):
    """Mean-of-|finite differences| TV loss of a (B, 3, D, H, W) field, one Pallas kernel."""
    assert displace.ndim == 5 and displace.shape[1] == 3
    B, C3, D, H, W = displace.shape
    assert D >= 2 and H >= 2 and W >= 2
    G = B * C3
    HW = H * W
    # TODO(synk): pltpu.roll on an HW axis that is not a multiple of 128 may hit Mosaic
    # lowering limits; typical registration grids (HW % 128 == 0) take the fast path.
    d3 = displace.reshape(G, D, HW)     # free reshape: NO transposed copies of the field
    td = _pick_tv_rows(D, HW, d_per_step)
    dt = D // td

    sums = pl.pallas_call(
        functools.partial(_tv_kernel, td=td, hw=HW, w=W),
        out_shape=jax.ShapeDtypeStruct((G, 1, 128), jnp.float32),
        grid=(G, dt),
        in_specs=[pl.BlockSpec((1, td, HW), lambda g, k: (g, k, 0))],
        out_specs=pl.BlockSpec((1, 1, 128), lambda g, k: (g, 0, 0)),
        scratch_shapes=[pltpu.VMEM((1, HW), jnp.float32),    # dz accumulator (lane-dense)
                        pltpu.VMEM((1, HW), jnp.float32),    # dy accumulator (lane-dense)
                        pltpu.VMEM((1, HW), jnp.float32),    # dx accumulator (lane-dense)
                        pltpu.VMEM((1, HW), jnp.float32)],   # carry (last D-row)
        compiler_params=_COMPILER_PARAMS,
    )(d3)

    sz = jnp.sum(sums[:, 0, 0])
    sy = jnp.sum(sums[:, 0, 1])
    sx = jnp.sum(sums[:, 0, 2])
    cz = float(G * (D - 1) * H * W)
    cy = float(G * D * (H - 1) * W)
    cx = float(G * D * H * (W - 1))
    return (sz / cz + sy / cy + sx / cx) / 3.0


# --------------------------------------------------------------------------------------
# TrainLoss module
# --------------------------------------------------------------------------------------
class TrainLoss:
    """JAX/Pallas port of utils.loss.TrainLoss (default config: NCC + 0.5*tv)."""

    def __init__(self, sim='NCC', reg='tv', alpha='0.5', alp_sca=1.0):
        # TODO(synk): MSE / local-NCC similarity and l2 / jac regularizers are not
        # ported to Pallas; only the default (sim='NCC', reg='tv') path is kernelized.
        assert sim == 'NCC', "only sim='NCC' is implemented as a Pallas kernel"
        if reg is None:
            self.reg_terms = []
        else:
            assert len(reg.split('_')) == len(alpha.split('_'))
            self.reg_terms = list(zip(reg.split('_'),
                                      [float(a) for a in alpha.split('_')]))
            for r, _ in self.reg_terms:
                assert r == 'tv', "only reg='tv' is implemented as a Pallas kernel"
        self.alp_sca = alp_sca

    def __call__(self, deformed_img, template_img, displace_field, idx=0,
                 ncc_rows_per_step=None, tv_d_per_step=None):
        sim_loss = ncc_loss_pallas(deformed_img, template_img,
                                   rows_per_step=ncc_rows_per_step)
        reg_loss = jnp.float32(0.0)
        if self.reg_terms:
            tv = tv_loss_pallas(displace_field, d_per_step=tv_d_per_step)
            for _, a in self.reg_terms:
                reg_loss = reg_loss + (self.alp_sca ** idx) * a * tv
        tot_loss = sim_loss + reg_loss
        # NOTE: torch returns (tot, sim.item(), reg.item()); jnp scalars are returned
        # instead so the loss stays usable under jit/grad (call float() eagerly if needed).
        return tot_loss, sim_loss, reg_loss


# --------------------------------------------------------------------------------------
# Self-test
# --------------------------------------------------------------------------------------
if __name__ == "__main__":
    key = jax.random.PRNGKey(0)
    k1, k2, k3 = jax.random.split(key, 3)
    B, D, H, W = 2, 16, 16, 16
    deformed = jax.random.uniform(k1, (B, 1, D, H, W), dtype=jnp.float32)
    template = jax.random.uniform(k2, (B, 1, D, H, W), dtype=jnp.float32)
    displace = 0.1 * jax.random.normal(k3, (B, 3, D, H, W), dtype=jnp.float32)

    loss_mod = TrainLoss(sim='NCC', reg='tv', alpha='0.5', alp_sca=1.0)

    # default (performance) tiling
    tot, sim, reg = loss_mod(deformed, template, displace, idx=0)
    # small tiles: force the multi-step streaming-accumulator / D-tile-carry paths
    tot_s, sim_s, reg_s = loss_mod(deformed, template, displace, idx=0,
                                   ncc_rows_per_step=8, tv_d_per_step=8)
    jax.block_until_ready((tot, tot_s))

    # plain-JAX reference
    def ref_ncc(x, y, eps=1e-8):
        xm = jnp.mean(x, axis=(2, 3, 4), keepdims=True)
        ym = jnp.mean(y, axis=(2, 3, 4), keepdims=True)
        xc, yc = x - xm, y - ym
        num = jnp.sum(xc * yc, axis=(2, 3, 4))
        den = jnp.sqrt(jnp.sum(xc ** 2, axis=(2, 3, 4)) *
                       jnp.sum(yc ** 2, axis=(2, 3, 4)) + eps)
        return -jnp.mean(num / den)

    def ref_tv(d):
        dz = jnp.abs(d[:, :, 1:, :, :] - d[:, :, :-1, :, :])
        dy = jnp.abs(d[:, :, :, 1:, :] - d[:, :, :, :-1, :])
        dx = jnp.abs(d[:, :, :, :, 1:] - d[:, :, :, :, :-1])
        return (jnp.mean(dz) + jnp.mean(dy) + jnp.mean(dx)) / 3.0

    ref_sim = ref_ncc(deformed, template)
    ref_reg = 0.5 * ref_tv(displace)
    ref_tot = ref_sim + ref_reg

    for name, got, want in [("tot", tot, ref_tot), ("sim", sim, ref_sim),
                            ("reg", reg, ref_reg),
                            ("tot_small_tiles", tot_s, ref_tot),
                            ("sim_small_tiles", sim_s, ref_sim),
                            ("reg_small_tiles", reg_s, ref_reg)]:
        assert jnp.allclose(got, want, atol=1e-5, rtol=1e-5), (name, float(got), float(want))

    print("KERNEL_OK")
</pallas_src>

<mosaic_0001>
module attributes {stable_mosaic.version = 11 : i64} {
  func.func @_ncc_kernel(%arg0: i32, %arg1: i32, %arg2: memref<1x32x128xf32, #tpu.memory_space<vmem>>, %arg3: memref<1x32x128xf32, #tpu.memory_space<vmem>>, %arg4: memref<1x1x128xf32, #tpu.memory_space<vmem>>, %arg5: memref<5x1x128xf32, #tpu.memory_space<vmem>>) attributes {dimension_semantics = [#tpu.dimension_semantics<parallel>, #tpu.dimension_semantics<arbitrary>], iteration_bounds = array<i64: 2, 1>, scalar_prefetch = 0 : i64, scratch_operands = 1 : i64, tpu.core_type = #tpu.core_type<tc>, window_params = [{transform_indices = @transform_0, window_bounds = array<i64: 1, 32, 128>}, {transform_indices = @transform_1, window_bounds = array<i64: 1, 32, 128>}, {transform_indices = @transform_2, window_bounds = array<i64: 1, 1, 128>}]} {
    %c0_i32 = arith.constant 0 : i32
    %0 = arith.cmpi eq, %arg1, %c0_i32 : i32
    %1 = arith.extui %0 : i1 to i32
    %c0_i32_0 = arith.constant 0 : i32
    %2 = arith.cmpi ne, %1, %c0_i32_0 : i32
    scf.if %2 {
      %cst_38 = arith.constant 0.000000e+00 : f32
      %63 = vector.broadcast %cst_38 : f32 to vector<5x1x128xf32>
      %c0_39 = arith.constant 0 : index
      %c0_40 = arith.constant 0 : index
      %c0_41 = arith.constant 0 : index
      %64 = vector.load %arg5[%c0_39, %c0_40, %c0_41] : memref<5x1x128xf32, #tpu.memory_space<vmem>>, vector<5x1x128xf32>
      tpu.vector_store %arg5[%c0_39, %c0_40, %c0_41], %63 {strides = array<i32>} : memref<5x1x128xf32, #tpu.memory_space<vmem>>, vector<5x1x128xf32>,
    } else {
    }
    %cst = arith.constant 0.000000e+00 : f32
    %3 = vector.broadcast %cst : f32 to vector<1x128xf32>
    %c0_i32_1 = arith.constant 0 : i32
    %c32_i32 = arith.constant 32 : i32
    %4 = arith.muli %c0_i32_1, %c32_i32 : i32
    %5 = tpu.assume_multiple %4, 32 : i32
    %c0 = arith.constant 0 : index
    %6 = arith.index_cast %5 : i32 to index
    %c0_2 = arith.constant 0 : index
    %7 = vector.load %arg2[%c0, %6, %c0_2] : memref<1x32x128xf32, #tpu.memory_space<vmem>>, vector<1x32x128xf32>
    %8 = vector.shape_cast %7 : vector<1x32x128xf32> to vector<32x128xf32>
    %c0_3 = arith.constant 0 : index
    %9 = arith.index_cast %5 : i32 to index
    %c0_4 = arith.constant 0 : index
    %10 = vector.load %arg3[%c0_3, %9, %c0_4] : memref<1x32x128xf32, #tpu.memory_space<vmem>>, vector<1x32x128xf32>
    %11 = vector.shape_cast %10 : vector<1x32x128xf32> to vector<32x128xf32>
    %cst_5 = arith.constant dense<0.000000e+00> : vector<128xf32>
    %12 = vector.multi_reduction <add>, %8, %cst_5 [0] : vector<32x128xf32> to vector<128xf32>
    %13 = vector.shape_cast %12 : vector<128xf32> to vector<1x128xf32>
    %14 = arith.addf %3, %13 : vector<1x128xf32>
    %cst_6 = arith.constant dense<0.000000e+00> : vector<128xf32>
    %15 = vector.multi_reduction <add>, %11, %cst_6 [0] : vector<32x128xf32> to vector<128xf32>
    %16 = vector.shape_cast %15 : vector<128xf32> to vector<1x128xf32>
    %17 = arith.addf %3, %16 : vector<1x128xf32>
    %18 = arith.mulf %8, %8 : vector<32x128xf32>
    %cst_7 = arith.constant dense<0.000000e+00> : vector<128xf32>
    %19 = vector.multi_reduction <add>, %18, %cst_7 [0] : vector<32x128xf32> to vector<128xf32>
    %20 = vector.shape_cast %19 : vector<128xf32> to vector<1x128xf32>
    %21 = arith.addf %3, %20 : vector<1x128xf32>
    %22 = arith.mulf %11, %11 : vector<32x128xf32>
    %cst_8 = arith.constant dense<0.000000e+00> : vector<128xf32>
    %23 = vector.multi_reduction <add>, %22, %cst_8 [0] : vector<32x128xf32> to vector<128xf32>
    %24 = vector.shape_cast %23 : vector<128xf32> to vector<1x128xf32>
    %25 = arith.addf %3, %24 : vector<1x128xf32>
    %26 = arith.mulf %8, %11 : vector<32x128xf32>
    %cst_9 = arith.constant dense<0.000000e+00> : vector<128xf32>
    %27 = vector.multi_reduction <add>, %26, %cst_9 [0] : vector<32x128xf32> to vector<128xf32>
    %28 = vector.shape_cast %27 : vector<128xf32> to vector<1x128xf32>
    %29 = arith.addf %3, %28 : vector<1x128xf32>
    %c1_i32 = arith.constant 1 : i32
    %c0_10 = arith.constant 0 : index
    %c0_11 = arith.constant 0 : index
    %c0_12 = arith.constant 0 : index
    %30 = vector.load %arg5[%c0_10, %c0_11, %c0_12] : memref<5x1x128xf32, #tpu.memory_space<vmem>>, vector<1x1x128xf32>
    %31 = vector.shape_cast %30 : vector<1x1x128xf32> to vector<1x128xf32>
    %32 = arith.addf %31, %14 : vector<1x128xf32>
    %c0_13 = arith.constant 0 : index
    %c0_14 = arith.constant 0 : index
    %c0_15 = arith.constant 0 : index
    %33 = vector.load %arg5[%c0_13, %c0_14, %c0_15] : memref<5x1x128xf32, #tpu.memory_space<vmem>>, vector<1x1x128xf32>
    %34 = vector.shape_cast %33 : vector<1x1x128xf32> to vector<1x128xf32>
    %35 = vector.shape_cast %32 : vector<1x128xf32> to vector<1x1x128xf32>
    tpu.vector_store %arg5[%c0_13, %c0_14, %c0_15], %35 {strides = array<i32>} : memref<5x1x128xf32, #tpu.memory_space<vmem>>, vector<1x1x128xf32>,
    %c1 = arith.constant 1 : index
    %c0_16 = arith.constant 0 : index
    %c0_17 = arith.constant 0 : index
    %36 = vector.load %arg5[%c1, %c0_16, %c0_17] : memref<5x1x128xf32, #tpu.memory_space<vmem>>, vector<1x1x128xf32>
    %37 = vector.shape_cast %36 : vector<1x1x128xf32> to vector<1x128xf32>
    %38 = arith.addf %37, %17 : vector<1x128xf32>
    %c1_18 = arith.constant 1 : index
    %c0_19 = arith.constant 0 : index
    %c0_20 = arith.constant 0 : index
    %39 = vector.load %arg5[%c1_18, %c0_19, %c0_20] : memref<5x1x128xf32, #tpu.memory_space<vmem>>, vector<1x1x128xf32>
    %40 = vector.shape_cast %39 : vector<1x1x128xf32> to vector<1x128xf32>
    %41 = vector.shape_cast %38 : vector<1x128xf32> to vector<1x1x128xf32>
    tpu.vector_store %arg5[%c1_18, %c0_19, %c0_20], %41 {strides = array<i32>} : memref<5x1x128xf32, #tpu.memory_space<vmem>>, vector<1x1x128xf32>,
    %c2 = arith.constant 2 : index
    %c0_21 = arith.constant 0 : index
    %c0_22 = arith.constant 0 : index
    %42 = vector.load %arg5[%c2, %c0_21, %c0_22] : memref<5x1x128xf32, #tpu.memory_space<vmem>>, vector<1x1x128xf32>
    %43 = vector.shape_cast %42 : vector<1x1x128xf32> to vector<1x128xf32>
    %44 = arith.addf %43, %21 : vector<1x128xf32>
    %c2_23 = arith.constant 2 : index
    %c0_24 = arith.constant 0 : index
    %c0_25 = arith.constant 0 : index
    %45 = vector.load %arg5[%c2_23, %c0_24, %c0_25] : memref<5x1x128xf32, #tpu.memory_space<vmem>>, vector<1x1x128xf32>
    %46 = vector.shape_cast %45 : vector<1x1x128xf32> to vector<1x128xf32>
    %47 = vector.shape_cast %44 : vector<1x128xf32> to vector<1x1x128xf32>
    tpu.vector_store %arg5[%c2_23, %c0_24, %c0_25], %47 {strides = array<i32>} : memref<5x1x128xf32, #tpu.memory_space<vmem>>, vector<1x1x128xf32>,
    %c3 = arith.constant 3 : index
    %c0_26 = arith.constant 0 : index
    %c0_27 = arith.constant 0 : index
    %48 = vector.load %arg5[%c3, %c0_26, %c0_27] : memref<5x1x128xf32, #tpu.memory_space<vmem>>, vector<1x1x128xf32>
    %49 = vector.shape_cast %48 : vector<1x1x128xf32> to vector<1x128xf32>
    %50 = arith.addf %49, %25 : vector<1x128xf32>
    %c3_28 = arith.constant 3 : index
    %c0_29 = arith.constant 0 : index
    %c0_30 = arith.constant 0 : index
    %51 = vector.load %arg5[%c3_28, %c0_29, %c0_30] : memref<5x1x128xf32, #tpu.memory_space<vmem>>, vector<1x1x128xf32>
    %52 = vector.shape_cast %51 : vector<1x1x128xf32> to vector<1x128xf32>
    %53 = vector.shape_cast %50 : vector<1x128xf32> to vector<1x1x128xf32>
    tpu.vector_store %arg5[%c3_28, %c0_29, %c0_30], %53 {strides = array<i32>} : memref<5x1x128xf32, #tpu.memory_space<vmem>>, vector<1x1x128xf32>,
    %c4 = arith.constant 4 : index
    %c0_31 = arith.constant 0 : index
    %c0_32 = arith.constant 0 : index
    %54 = vector.load %arg5[%c4, %c0_31, %c0_32] : memref<5x1x128xf32, #tpu.memory_space<vmem>>, vector<1x1x128xf32>
    %55 = vector.shape_cast %54 : vector<1x1x128xf32> to vector<1x128xf32>
    %56 = arith.addf %55, %29 : vector<1x128xf32>
    %c4_33 = arith.constant 4 : index
    %c0_34 = arith.constant 0 : index
    %c0_35 = arith.constant 0 : index
    %57 = vector.load %arg5[%c4_33, %c0_34, %c0_35] : memref<5x1x128xf32, #tpu.memory_space<vmem>>, vector<1x1x128xf32>
    %58 = vector.shape_cast %57 : vector<1x1x128xf32> to vector<1x128xf32>
    %59 = vector.shape_cast %56 : vector<1x128xf32> to vector<1x1x128xf32>
    tpu.vector_store %arg5[%c4_33, %c0_34, %c0_35], %59 {strides = array<i32>} : memref<5x1x128xf32, #tpu.memory_space<vmem>>, vector<1x1x128xf32>,
    %c0_i32_36 = arith.constant 0 : i32
    %60 = arith.cmpi eq, %arg1, %c0_i32_36 : i32
    %61 = arith.extui %60 : i1 to i32
    %c0_i32_37 = arith.constant 0 : i32
    %62 = arith.cmpi ne, %61, %c0_i32_37 : i32
    scf.if %62 {
      %c0_38 = arith.constant 0 : index
      %c0_39 = arith.constant 0 : index
      %c0_40 = arith.constant 0 : index
      %63 = vector.load %arg5[%c0_38, %c0_39, %c0_40] : memref<5x1x128xf32, #tpu.memory_space<vmem>>, vector<1x1x128xf32>
      %64 = vector.shape_cast %63 : vector<1x1x128xf32> to vector<1x128xf32>
      %65 = vector.shape_cast %64 : vector<1x128xf32> to vector<1x1x128xf32>
      %cst_41 = arith.constant dense<0.000000e+00> : vector<1xf32>
      %66 = vector.multi_reduction <add>, %65, %cst_41 [1, 2] : vector<1x1x128xf32> to vector<1xf32>
      %67 = vector.shape_cast %66 : vector<1xf32> to vector<1x1x1xf32>
      %68 = vector.extract %67[0, 0, 0] : f32 from vector<1x1x1xf32>
      %69 = vector.broadcast %68 : f32 to vector<1x1xf32>
      %c1_42 = arith.constant 1 : index
      %c0_43 = arith.constant 0 : index
      %c0_44 = arith.constant 0 : index
      %70 = vector.load %arg5[%c1_42, %c0_43, %c0_44] : memref<5x1x128xf32, #tpu.memory_space<vmem>>, vector<1x1x128xf32>
      %71 = vector.shape_cast %70 : vector<1x1x128xf32> to vector<1x128xf32>
      %72 = vector.shape_cast %71 : vector<1x128xf32> to vector<1x1x128xf32>
      %cst_45 = arith.constant dense<0.000000e+00> : vector<1xf32>
      %73 = vector.multi_reduction <add>, %72, %cst_45 [1, 2] : vector<1x1x128xf32> to vector<1xf32>
      %74 = vector.shape_cast %73 : vector<1xf32> to vector<1x1x1xf32>
      %75 = vector.extract %74[0, 0, 0] : f32 from vector<1x1x1xf32>
      %76 = vector.broadcast %75 : f32 to vector<1x1xf32>
      %c2_46 = arith.constant 2 : index
      %c0_47 = arith.constant 0 : index
      %c0_48 = arith.constant 0 : index
      %77 = vector.load %arg5[%c2_46, %c0_47, %c0_48] : memref<5x1x128xf32, #tpu.memory_space<vmem>>, vector<1x1x128xf32>
      %78 = vector.shape_cast %77 : vector<1x1x128xf32> to vector<1x128xf32>
      %79 = vector.shape_cast %78 : vector<1x128xf32> to vector<1x1x128xf32>
      %cst_49 = arith.constant dense<0.000000e+00> : vector<1xf32>
      %80 = vector.multi_reduction <add>, %79, %cst_49 [1, 2] : vector<1x1x128xf32> to vector<1xf32>
      %81 = vector.shape_cast %80 : vector<1xf32> to vector<1x1x1xf32>
      %82 = vector.extract %81[0, 0, 0] : f32 from vector<1x1x1xf32>
      %83 = vector.broadcast %82 : f32 to vector<1x1xf32>
      %c3_50 = arith.constant 3 : index
      %c0_51 = arith.constant 0 : index
      %c0_52 = arith.constant 0 : index
      %84 = vector.load %arg5[%c3_50, %c0_51, %c0_52] : memref<5x1x128xf32, #tpu.memory_space<vmem>>, vector<1x1x128xf32>
      %85 = vector.shape_cast %84 : vector<1x1x128xf32> to vector<1x128xf32>
      %86 = vector.shape_cast %85 : vector<1x128xf32> to vector<1x1x128xf32>
      %cst_53 = arith.constant dense<0.000000e+00> : vector<1xf32>
      %87 = vector.multi_reduction <add>, %86, %cst_53 [1, 2] : vector<1x1x128xf32> to vector<1xf32>
      %88 = vector.shape_cast %87 : vector<1xf32> to vector<1x1x1xf32>
      %89 = vector.extract %88[0, 0, 0] : f32 from vector<1x1x1xf32>
      %90 = vector.broadcast %89 : f32 to vector<1x1xf32>
      %c4_54 = arith.constant 4 : index
      %c0_55 = arith.constant 0 : index
      %c0_56 = arith.constant 0 : index
      %91 = vector.load %arg5[%c4_54, %c0_55, %c0_56] : memref<5x1x128xf32, #tpu.memory_space<vmem>>, vector<1x1x128xf32>
      %92 = vector.shape_cast %91 : vector<1x1x128xf32> to vector<1x128xf32>
      %93 = vector.shape_cast %92 : vector<1x128xf32> to vector<1x1x128xf32>
      %cst_57 = arith.constant dense<0.000000e+00> : vector<1xf32>
      %94 = vector.multi_reduction <add>, %93, %cst_57 [1, 2] : vector<1x1x128xf32> to vector<1xf32>
      %95 = vector.shape_cast %94 : vector<1xf32> to vector<1x1x1xf32>
      %96 = vector.extract %95[0, 0, 0] : f32 from vector<1x1x1xf32>
      %97 = vector.broadcast %96 : f32 to vector<1x1xf32>
      %98 = arith.mulf %69, %76 : vector<1x1xf32>
      %cst_58 = arith.constant 4.096000e+03 : f32
      %99 = vector.broadcast %cst_58 : f32 to vector<1x1xf32>
      %100 = arith.divf %98, %99 : vector<1x1xf32>
      %101 = arith.subf %97, %100 : vector<1x1xf32>
      %102 = arith.mulf %69, %69 : vector<1x1xf32>
      %cst_59 = arith.constant 4.096000e+03 : f32
      %103 = vector.broadcast %cst_59 : f32 to vector<1x1xf32>
      %104 = arith.divf %102, %103 : vector<1x1xf32>
      %105 = arith.subf %83, %104 : vector<1x1xf32>
      %106 = arith.mulf %76, %76 : vector<1x1xf32>
      %cst_60 = arith.constant 4.096000e+03 : f32
      %107 = vector.broadcast %cst_60 : f32 to vector<1x1xf32>
      %108 = arith.divf %106, %107 : vector<1x1xf32>
      %109 = arith.subf %90, %108 : vector<1x1xf32>
      %110 = arith.mulf %105, %109 : vector<1x1xf32>
      %cst_61 = arith.constant 9.99999993E-9 : f32
      %111 = vector.broadcast %cst_61 : f32 to vector<1x1xf32>
      %112 = arith.addf %110, %111 : vector<1x1xf32>
      %113 = math.sqrt %112 : vector<1x1xf32>
      %114 = arith.divf %101, %113 : vector<1x1xf32>
      %115 = vector.shape_cast %114 : vector<1x1xf32> to vector<1x1x1xf32>
      %116 = vector.shape_cast %115 : vector<1x1x1xf32> to vector<1x1x1xf32>
      %117 = vector.broadcast %116 : vector<1x1x1xf32> to vector<1x1x128xf32>
      %c0_62 = arith.constant 0 : index
      %c0_63 = arith.constant 0 : index
      %c0_64 = arith.constant 0 : index
      %118 = vector.load %arg4[%c0_62, %c0_63, %c0_64] : memref<1x1x128xf32, #tpu.memory_space<vmem>>, vector<1x1x128xf32>
      tpu.vector_store %arg4[%c0_62, %c0_63, %c0_64], %117 {strides = array<i32>} : memref<1x1x128xf32, #tpu.memory_space<vmem>>, vector<1x1x128xf32>,
    } else {
    }
    return
  }
  func.func @transform_0(%arg0: i32, %arg1: i32) -> (i32, i32, i32) {
    %c0_i32 = arith.constant 0 : i32
    %c0_i32_0 = arith.constant 0 : i32
    return %arg0, %arg1, %c0_i32 : i32, i32, i32
  }
  func.func @transform_1(%arg0: i32, %arg1: i32) -> (i32, i32, i32) {
    %c0_i32 = arith.constant 0 : i32
    %c0_i32_0 = arith.constant 0 : i32
    return %arg0, %arg1, %c0_i32 : i32, i32, i32
  }
  func.func @transform_2(%arg0: i32, %arg1: i32) -> (i32, i32, i32) {
    %c0_i32 = arith.constant 0 : i32
    %c0_i32_0 = arith.constant 0 : i32
    %c0_i32_1 = arith.constant 0 : i32
    return %arg0, %c0_i32, %c0_i32_0 : i32, i32, i32
  }
}

</mosaic_0001>

<bundles_post_ra>
// kernel: tpu_custom_call.1
= control target key start
LH: loop header
LB: loop body
LE: loop exit
PB: predicated region body
PF: predicated region fallthrough
CT: control target
= control target key end

     0   :  { %7 = vsyncpa [#allocation4], 0  ;;  %s964_s0 = inlined_call_operand.hbm [shape: f32[2,32,128], index: 0, kind: input, shape index: {}]   ;;  %s965_s1 = inlined_call_operand.hbm [shape: f32[2,32,128], index: 1, kind: input, shape index: {}]   ;;  %s966_s2 = inlined_call_operand.hbm [shape: f32[2,1,128], index: 2, kind: output, shape index: {}]  }
   0x1   :  { %9 = vsyncpa [#allocation4 + $0x1], 0 }
   0x2   :  { %10 = vsyncpa [#allocation7], 0 }
   0x3   :  { %12 = vsyncpa [#allocation7 + $0x1], 0 }
   0x4   :  { %13 = vsyncpa [#allocation5], 0 }
   0x5   :  { %15 = vsyncpa [#allocation5 + $0x1], 0  ;;  %s822_s9 = smov 0   ;;  %s824_s10 = smov 0  }
   0x6   :  { %s826_s11 = smov 0   ;;  %s828_s12 = smov 0  }
   0x7   :  { %s830_s13 = smov 0   ;;  %s832_s14 = smov 0  }
   0x8 LB: > { %s551_s15 = sadd.s32 4294967295, %s801_s14   ;;  %s552_s16 = sadd.s32 4294967294, %s801_s14   ;;  %s801_s14 = sphi %s832_s14, %s21_s14   ;;  %s797_s13 = sphi %s830_s13, %s976_s13   ;;  %s793_s12 = sphi %s828_s12, %s975_s12   ;;  %s789_s11 = sphi %s826_s11, %s974_s11   ;;  %s785_s10 = sphi %s824_s10, %s973_s10   ;;  %s781_s9 = sphi %s822_s9, %s972_s9  }
   0x9   : > { %s33_s17 = sadd.s32 1, %s797_s13  ;;  %s42_s18 = sadd.s32 1, %s789_s11 }
   0xa   : > { %p35_p0 = scmp.ge.s32.totalorder %s33_s17, 2  ;;  %p49_p1 = scmp.ne.s32.totalorder %s789_s11, %s785_s10 }
   0xb   : > { %p50_p2 = scmp.eq.s32.totalorder %s801_s14, 0  ;;  %p55_p3 = scmp.ne.s32.totalorder %s785_s10, %s781_s9 }
   0xc   : > { %s978_s17 = smov (%p35_p0, %s33_s17), 0  ;;  %p56_p5 = scmp.eq.s32.totalorder %s551_s15, 0 }
   0xd   : > { %p863_p4 = por %p50_p2, %p49_p1  ;;  %s37_s20 = ssub.s32 %s797_s13, %s978_s17 }
   0xe   : > { %p107_p6 = scmp.eq.s32.totalorder %s551_s15, 1  ;;  %p40_p7 = scmp.eq.s32.totalorder %s37_s20, 0 }
   0xf   : > { %p869_p8 = por %p56_p5, %p55_p3  ;;  %p113_p10 = scmp.eq.s32.totalorder %s552_s16, 1 }
  0x10   : > { %p873_p9 = por %p107_p6, %p49_p1  ;;  %p554_p12 = scmp.ge.s32.totalorder %s801_s14, 2 }
  0x11   : > { %s878_s23 = scalar_select %p40_p7, %s789_s11, %s42_s18  }
  0x12   : > { %p880_p11 = por %p113_p10, %p55_p3  ;;  %p595_p13 = scmp.lt.s32.totalorder %s801_s14, 2 }
  0x13   : > { %s887_s25 = sand.u32 1, %s789_s11   ;;  %s566_s27 = sshll.u32 %s797_s13, 5 }
  0x14   : > { %s555_s26 = sshll.u32 %s887_s25, 5  ;;  %s144_s30 = scalar_lea.hbm %s964_s0, %s566_s27 }
  0x15   : > { %s137_s3 = scalar_lea.vmem [#allocation3], %s555_s26  ;;  %s145_s5 = sshll.u32 %s144_s30, 4  ;;  %s146_s5 = int_to_ptr.hbm [resolvable:$true] %s145_s5 }
  0x16   : > { %s147_s4 = sshll.u32 %s137_s3, 4  ;;  %p896_p0 = pnand %p595_p13, %p863_p4  ;;  %s148_s4 = int_to_ptr.vmem [resolvable:$true] %s147_s4 }
  0x17   : > { %p561_p1 = scmp.ge.s32.totalorder %s801_s14, 1  ;;  %s134_s7 = scalar_lea.sflag [#allocation4], %s887_s25 }
  0x18   : > { %s803_s8 = smov 128   ;;  %s804_s15 = smov 8  }
  0x19   : > { %587 = dma.hbm_to_vmem [thread:$0]  (!%p896_p0), %s146_s5, 512, %s148_s4, %s134_s7, %s803_s8, %s803_s8, %s804_s15  }
  0x1a   : > { %p179_p2 = scmp.lt.s32.totalorder %s801_s14, 3  ;;  %s168_s20 = scalar_lea.hbm %s965_s1, %s566_s27 }
  0x1b   : > { %s169_s28 = sshll.u32 %s168_s20, 4  ;;  %s161_s19 = scalar_lea.vmem [#allocation6], %s555_s26  ;;  %s170_s28 = int_to_ptr.hbm [resolvable:$true] %s169_s28 }
  0x1c   : > { %p180_p3 = pnand %p561_p1, %p179_p2  ;;  %s171_s29 = sshll.u32 %s161_s19, 4  ;;  %s172_s29 = int_to_ptr.vmem [resolvable:$true] %s171_s29 }
  0x1d   : > { %s158_s30 = scalar_lea.sflag [#allocation7], %s887_s25  ;;  %s912_s3 = sand.u32 (!%p180_p3), 1, %s785_s10  }
  0x1e   : > { %590 = dma.hbm_to_vmem [thread:$0]  (!%p896_p0), %s170_s28, 512, %s172_s29, %s158_s30, %s803_s8, %s803_s8, %s804_s15  }
  0x1f   : > { %183 = sbr.rel (%p180_p3) target bundleno = 309 (0x135), region = 28  ;;  %s562_s4 = sshll.u32 (!%p180_p3), %s912_s3, 5 }
  0x20   : > { %s186_s5 = scalar_lea.sflag (!%p180_p3), [#allocation4], %s912_s3  ;;  %s189_s7 = scalar_lea.vmem (!%p180_p3), [#allocation3], %s562_s4 }
  0x24   : > { %768 = dma.done.wait (%p869_p8), %s186_s5, 512  }
  0x25   : > { %770 = vsyncadd (%p869_p8), %s186_s5, 4294966784  ;;  %s196_s25 = scalar_lea.sflag [#allocation7], %s912_s3  ;;  %s199_s26 = scalar_lea.vmem [#allocation6], %s562_s4 }
  0x26   : > { %772 = dma.done.wait (%p869_p8), %s196_s25, 512  }
  0x27   : > { %774 = vsyncadd (%p869_p8), %s196_s25, 4294966784  ;;  %v805_v0 = vmov 0.0   ;;  %v236_v1 = vld [vmem:[%s189_s7] sm:$0xff]  ;;  %v237_v2 = vld [vmem:[%s189_s7 + $0x8] sm:$0xff]  ;;  %vm329_vm0 = vcmask 1040384   ;;  %s444_s20 = scalar_lea.hbm %s966_s2, %s793_s12  ;;  %s224_s28 = scalar_lea.vmem [#allocation8], %s912_s3 }
  0x28   : > { %231 = vst [vmem:[#allocation2] sm:$0x1] %v805_v0  ;;  %v238_v3 = vld [vmem:[%s189_s7 + $0x10] sm:$0xff]  ;;  %v239_v4 = vld [vmem:[%s189_s7 + $0x18] sm:$0xff]  ;;  %v244_v5 = vadd.f32 %v237_v2, %v236_v1  ;;  %v264_v6 = vmul.f32 %v236_v1, %v236_v1  ;;  %v265_v7 = vmul.f32 %v237_v2, %v237_v2  ;;  %v240_v9 = vld [vmem:[%s199_s26] sm:$0xff]  ;;  %s446_s19 = sshll.u32 %s224_s28, 4  ;;  %s447_s19 = int_to_ptr.vmem [resolvable:$true] %s446_s19 }
  0x29   : > { %232 = vst [vmem:[#allocation2 + $0x1] sm:$0x1] %v805_v0  ;;  %v266_v8 = vmul.f32 %v238_v3, %v238_v3  ;;  %v267_v10 = vmul.f32 %v239_v4, %v239_v4  ;;  %v241_v11 = vld [vmem:[%s199_s26 + $0x8] sm:$0xff]  ;;  %v242_v12 = vld [vmem:[%s199_s26 + $0x10] sm:$0xff]  ;;  %v243_v13 = vld [vmem:[%s199_s26 + $0x18] sm:$0xff]  ;;  %v278_v14 = vmul.f32 %v240_v9, %v240_v9  ;;  %v292_v15 = vmul.f32 %v240_v9, %v236_v1  ;;  %s448_s29 = sshll.u32 %s444_s20, 4  ;;  %s449_s29 = int_to_ptr.hbm [resolvable:$true] %s448_s29 }
  0x2a   : > { %233 = vst [vmem:[#allocation2 + $0x2] sm:$0x1] %v805_v0  ;;  %v245_v16 = vadd.f32 %v244_v5, %v238_v3  ;;  %v268_v17 = vadd.f32 %v265_v7, %v264_v6  ;;  %v254_v18 = vadd.f32 %v241_v11, %v240_v9  ;;  %v279_v19 = vmul.f32 %v241_v11, %v241_v11  ;;  %s436_s30 = scalar_lea.sflag [#allocation5], %s912_s3  ;;  %s729_s12 = sshra.s32 %s449_s29, 4  ;;  %s730_s12 = int_to_ptr.hbm [resolvable:$true] %s729_s12 }
  0x2b   : > { %234 = vst [vmem:[#allocation2 + $0x3] sm:$0x1] %v805_v0  ;;  %v280_v20 = vmul.f32 %v242_v12, %v242_v12  ;;  %v281_v21 = vmul.f32 %v243_v13, %v243_v13  ;;  %v293_v22 = vmul.f32 %v241_v11, %v237_v2  ;;  %v294_v23 = vmul.f32 %v242_v12, %v238_v3  ;;  %s731_s4 = scalar_lea.hbm %s730_s12, 1  ;;  %s735_s25 = scalar_lea.hbm %s966_s2, 2 }
  0x2c   : > { %235 = vst [vmem:[#allocation2 + $0x4] sm:$0x1] %v805_v0  ;;  %v246_v24 = vadd.f32 %v245_v16, %v239_v4  ;;  %v269_v25 = vadd.f32 %v268_v17, %v266_v8  ;;  %v255_v26 = vadd.f32 %v254_v18, %v242_v12  ;;  %v282_v27 = vadd.f32 %v279_v19, %v278_v14  ;;  %p732_p4 = scmp.ne.s32.totalorder %s730_s12, %s731_s4  ;;  %p736_p7 = scmp.lt.s32.totalorder %s730_s12, %s966_s2 }
  0x2d   : > { %v295_v28 = vmul.f32 %v243_v13, %v239_v4  ;;  %v296_v29 = vadd.f32 %v293_v22, %v292_v15  ;;  %p737_p8 = scmp.lt.s32.totalorder %s735_s25, %s731_s4 }
  0x2e   : > { %v247_v30 = vrot.slane %v246_v24, 4  ;;  %v270_v31 = vadd.f32 %v269_v25, %v267_v10  ;;  %v256_v32 = vadd.f32 %v255_v26, %v243_v13  ;;  %v283_v33 = vadd.f32 %v282_v27, %v280_v20  ;;  %p733_p5 = pnand %p732_p4, %p873_p9 }
  0x2f   : > { %v297_v34 = vadd.f32 %v296_v29, %v294_v23  ;;  %v306_v54 = vld [vmem:[#allocation2] sm:$0x1]  ;;  %p738_p10 = por %p737_p8, %p736_p7 }
  0x30   : > { %v248_v35 = vadd.f32 %v247_v30, %v246_v24  ;;  %v271_v36 = vrot.slane %v270_v31, 4  ;;  %v257_v37 = vrot.slane %v256_v32, 4  ;;  %v284_v38 = vadd.f32 %v283_v33, %v281_v21  ;;  %v310_v61 = vld [vmem:[#allocation2 + $0x1] sm:$0x1]  ;;  %p734_p6 = pneg %p733_p5 }
  0x31   : > { %v298_v39 = vadd.f32 %v297_v34, %v295_v28  ;;  %v314_v60 = vld [vmem:[#allocation2 + $0x2] sm:$0x1] }
  0x32   : > { %v249_v40 = vrot.slane %v248_v35, 2  ;;  %v272_v41 = vadd.f32 %v271_v36, %v270_v31  ;;  %v258_v42 = vadd.f32 %v257_v37, %v256_v32  ;;  %v285_v43 = vrot.slane %v284_v38, 4  ;;  %v318_v3 = vld [vmem:[#allocation2 + $0x3] sm:$0x1]  ;;  %p739_p13 = pnand %p738_p10, %p734_p6 }
  0x33   : > { %v299_v44 = vrot.slane %v298_v39, 4  ;;  %v322_v8 = vld [vmem:[#allocation2 + $0x4] sm:$0x1] }
  0x34   : > { %v250_v45 = vadd.f32 %v249_v40, %v248_v35  ;;  %v273_v46 = vrot.slane %v272_v41, 2  ;;  %v259_v47 = vrot.slane %v258_v42, 2  ;;  %v286_v48 = vadd.f32 %v285_v43, %v284_v38 }
  0x35   : > { %v300_v49 = vadd.f32 %v299_v44, %v298_v39 }
  0x36   : > { %v251_v50 = vrot.slane %v250_v45, 1  ;;  %v274_v51 = vadd.f32 %v273_v46, %v272_v41  ;;  %v260_v52 = vadd.f32 %v259_v47, %v258_v42  ;;  %v287_v53 = vrot.slane %v286_v48, 2 }
  0x37   : > { %v301_v55 = vrot.slane %v300_v49, 2 }
  0x38   : > { %v252_v56 = vadd.f32 %v251_v50, %v250_v45  ;;  %v275_v57 = vrot.slane %v274_v51, 1  ;;  %v261_v58 = vrot.slane %v260_v52, 1  ;;  %v288_v59 = vadd.f32 %v287_v53, %v286_v48 }
  0x39   : > { %v302_v62 = vadd.f32 %v301_v55, %v300_v49 }
  0x3a   : > { %v307_v63 = vadd.f32 %v306_v54, %v252_v56  ;;  %v276_v0 = vadd.f32 %v275_v57, %v274_v51  ;;  %v262_v1 = vadd.f32 %v261_v58, %v260_v52  ;;  %v289_v2 = vrot.slane %v288_v59, 1 }
  0x3b   : > { %v303_v4 = vrot.slane %v302_v62, 1  ;;  %v806_v57 = vmov 4096.0  }
  0x3c   : > { %308 = vst [vmem:[#allocation2] sm:$0x1] %v307_v63  ;;  %v315_v5 = vadd.f32 %v314_v60, %v276_v0  ;;  %v311_v6 = vadd.f32 %v310_v61, %v262_v1  ;;  %v290_v7 = vadd.f32 %v289_v2, %v288_v59  ;;  %649 = vrcp.f32 %v806_v57 }
  0x3d   : > { %v304_v9 = vadd.f32 %v303_v4, %v302_v62 }
  0x3e   : > { %316 = vst [vmem:[#allocation2 + $0x2] sm:$0x1] %v315_v5  ;;  %v319_v10 = vadd.f32 %v318_v3, %v290_v7 }
  0x3f   : > { %312 = vst [vmem:[#allocation2 + $0x1] sm:$0x1] %v311_v6  ;;  %v323_v11 = vadd.f32 %v322_v8, %v304_v9 }
  0x40   : > { %320 = vst [vmem:[#allocation2 + $0x3] sm:$0x1] %v319_v10 }
  0x41   : > { %324 = vst [vmem:[#allocation2 + $0x4] sm:$0x1] %v323_v11 }
  0x42   : > { %v650_v58 = vpop.eup %649 }
  0x43   : > { %v328_v12 = vld [vmem:[#allocation2] sm:$0x1]  ;;  %v391_v59 = vmul.f32 4096.0, %v650_v58  ;;  %vm395_vm1 = vweird.f32 %v650_v58 }
  0x44   : > { %v330_v13 = vsel %vm329_vm0, %v328_v12, 0.0 }
  0x45   : > { %331 = vadd.xlane.f32.xlu0 %v330_v13  ;;  %v353_v14 = vld [vmem:[#allocation2 + $0x2] sm:$0x1]  ;;  %v392_v60 = vsub.f32 1.0, %v391_v59 }
  0x46   : > { %v354_v15 = vsel %vm329_vm0, %v353_v14, 0.0  ;;  %v341_v16 = vld [vmem:[#allocation2 + $0x1] sm:$0x1] }
  0x47   : > { %355 = vadd.xlane.f32.xlu1 %v354_v15  ;;  %v365_v18 = vld [vmem:[#allocation2 + $0x3] sm:$0x1]  ;;  %v342_v20 = vsel %vm329_vm0, %v341_v16, 0.0  ;;  %v393_v61 = vmul.f32 %v650_v58, %v392_v60 }
  0x48   : > { %v377_v17 = vld [vmem:[#allocation2 + $0x4] sm:$0x1]  ;;  %v366_v21 = vsel %vm329_vm0, %v365_v18, 0.0 }
  0x49   : > { %v378_v19 = vsel %vm329_vm0, %v377_v17, 0.0  ;;  %v394_v63 = vadd.f32 %v650_v58, %v393_v61 }
  0x4a   : > { %379 = vadd.xlane.f32.xlu2 %v378_v19 }
  0x4b   : > { %v396_v2 = vsel %vm395_vm1, %v650_v58, %v394_v63 }
  0x4d   : > { %343 = vadd.xlane.f32.xlu0 %v342_v20 }
  0x4f   : > { %367 = vadd.xlane.f32.xlu1 %v366_v21 }
  0xb8   : > { %v332_v22 = vpop.xlane.xlu0 %331 }
  0xb9   : > { %v333_v23 = vrot.slane %v332_v22, 4 }
  0xba   : > { %v356_v24 = vpop.xlane.xlu1 %355 }
  0xbb   : > { %v334_v25 = vadd.f32 %v333_v23, %v332_v22  ;;  %v357_v26 = vrot.slane %v356_v24, 4 }
  0xbd   : > { %v335_v27 = vrot.slane %v334_v25, 2  ;;  %v358_v28 = vadd.f32 %v357_v26, %v356_v24  ;;  %v380_v29 = vpop.xlane.xlu2 %379 }
  0xbe   : > { %v381_v30 = vrot.slane %v380_v29, 4 }
  0xbf   : > { %v336_v31 = vadd.f32 %v335_v27, %v334_v25  ;;  %v359_v32 = vrot.slane %v358_v28, 2 }
  0xc0   : > { %v344_v33 = vpop.xlane.xlu0 %343  ;;  %v382_v34 = vadd.f32 %v381_v30, %v380_v29 }
  0xc1   : > { %v345_v35 = vrot.slane %v344_v33, 4  ;;  %v337_v36 = vrot.slane %v336_v31, 1  ;;  %v360_v43 = vadd.f32 %v359_v32, %v358_v28 }
  0xc2   : > { %v368_v37 = vpop.xlane.xlu1 %367  ;;  %v383_v38 = vrot.slane %v382_v34, 2 }
  0xc3   : > { %v346_v39 = vadd.f32 %v345_v35, %v344_v33  ;;  %v369_v40 = vrot.slane %v368_v37, 4  ;;  %v338_v41 = vadd.f32 %v337_v36, %v336_v31  ;;  %v361_v48 = vrot.slane %v360_v43, 1 }
  0xc4   : > { %v384_v42 = vadd.f32 %v383_v38, %v382_v34 }
  0xc5   : > { %v347_v44 = vrot.slane %v346_v39, 2  ;;  %v370_v45 = vadd.f32 %v369_v40, %v368_v37  ;;  %568 = vpush %v338_v41  ;;  %v362_v54 = vadd.f32 %v361_v48, %v360_v43 }
  0xc6   : > { %v385_v49 = vrot.slane %v384_v42, 1 }
  0xc7   : > { %v348_v46 = vadd.f32 %v347_v44, %v346_v39  ;;  %v371_v47 = vrot.slane %v370_v45, 2 }
  0xc8   : > { %v386_v55 = vadd.f32 %v385_v49, %v384_v42 }
  0xc9   : > { %v372_v50 = vadd.f32 %v371_v47, %v370_v45  ;;  %v349_v51 = vrot.slane %v348_v46, 1 }
  0xcb   : > { %v350_v52 = vadd.f32 %v349_v51, %v348_v46  ;;  %v373_v53 = vrot.slane %v372_v50, 1 }
  0xcd   : > { %570 = vpush %v350_v52  ;;  %v374_v56 = vadd.f32 %v373_v53, %v372_v50 }
  0xce   : > { %572 = vpush %v362_v54 }
  0xcf   : > { %574 = vpush %v374_v56 }
  0xd0   : > { %576 = vpush %v386_v55 }
  0xf6   : > { %s569_s21 = spop %568 }
  0xf7   : > { %v340_v62 = vstv %s569_s21 }
  0xf8   : > { %v399_v0 = vmul.f32 %v340_v62, %v340_v62 }
  0xfa   : > { %v400_v5 = vmul.f32 %v399_v0, %v396_v2 }
  0xfe   : > { %s571_s27 = spop %570 }
  0xff   : > { %v352_v1 = vstv %s571_s27  ;;  %s573_s6 = spop %572 }
 0x100   : > { %v402_v3 = vmul.f32 %v352_v1, %v352_v1  ;;  %s575_s8 = spop %574  ;;  %v364_v4 = vstv %s573_s6  ;;  %v389_v23 = vmul.f32 %v352_v1, %v340_v62 }
 0x101   : > { %v376_v7 = vstv %s575_s8  ;;  %v401_v8 = vsub.f32 %v364_v4, %v400_v5  ;;  %s577_s15 = spop %576 }
 0x102   : > { %v403_v6 = vmul.f32 %v402_v3, %v396_v2  ;;  %v397_v27 = vmul.f32 %v396_v2, %v389_v23  ;;  %v388_v30 = vstv %s577_s15 }
 0x104   : > { %v404_v9 = vsub.f32 %v376_v7, %v403_v6  ;;  %v398_v33 = vsub.f32 %v388_v30, %v397_v27 }
 0x106   : > { %v405_v10 = vmul.f32 %v404_v9, %v401_v8 }
 0x108   : > { %v406_v11 = vadd.f32 1e-08, %v405_v10 }
 0x10a   : > { %651 = vrsqrt.f32 %v406_v11  ;;  %vm414_vm2 = vcmp.eq.f32.partialorder %v406_v11, inf  ;;  %v417_v19 = vand.u32 2147483648, %v406_v11  ;;  %vm416_vm3 = vcmp.eq.f32.partialorder %v406_v11, 0.0 }
 0x110   : > { %v652_v12 = vpop.eup %651 }
 0x111   : > { %v408_v13 = vmul.f32 %v652_v12, %v406_v11 }
 0x113   : > { %v409_v14 = vmul.f32 %v652_v12, %v408_v13 }
 0x115   : > { %v410_v15 = vmul.f32 0.5, %v409_v14 }
 0x117   : > { %v411_v16 = vsub.f32 1.5, %v410_v15 }
 0x119   : > { %v412_v17 = vmul.f32 %v652_v12, %v411_v16 }
 0x11b   : > { %v413_v18 = vmul.f32 %v412_v17, %v406_v11 }
 0x11d   : > { %v415_v20 = vsel %vm414_vm2, %v406_v11, %v413_v18 }
 0x11e   : > { %v418_v21 = vsel %vm416_vm3, %v417_v19, %v415_v20 }
 0x11f   : > { %653 = vrcp.f32 %v418_v21  ;;  %v430_v26 = vand.u32 2147483648, %v418_v21  ;;  %v428_v29 = vand.u32 2147483647, %v418_v21  ;;  %vm424_vm5 = vweird.f32 %v418_v21 }
 0x121   : > { %v431_v32 = vor.u32 1.1754944e-38, %v430_v26  ;;  %vm429_vm7 = vcmp.eq.f32.partialorder %v428_v29, 8.507059e+37 }
 0x125   : > { %v654_v22 = vpop.eup %653 }
 0x126   : > { %v420_v24 = vmul.f32 %v654_v22, %v418_v21  ;;  %vm425_vm4 = vweird.f32 %v654_v22 }
 0x127   : > { %vm426_vm6 = vmor %vm424_vm5, %vm425_vm4 }
 0x128   : > { %v421_v25 = vsub.f32 1.0, %v420_v24 }
 0x12a   : > { %v422_v28 = vmul.f32 %v654_v22, %v421_v25 }
 0x12c   : > { %v423_v31 = vadd.f32 %v654_v22, %v422_v28 }
 0x12e   : > { %v427_v34 = vsel %vm426_vm6, %v654_v22, %v423_v31 }
 0x12f   : > { %v432_v35 = vsel %vm429_vm7, %v431_v32, %v427_v34 }
 0x130   : > { %v433_v36 = vmul.f32 %v432_v35, %v398_v33 }
 0x132   : > { %434 = vst [vmem:[%s224_s28] sm:$0x1] %v433_v36 }
 0x133   : > { %742 = shalt.err (!%p739_p13)
}
 0x134   : > { %582 = dma.vmem_to_hbm [thread:$0]  (%p873_p9), %s447_s19, 16, %s449_s29, %s436_s30  }
 0x135 PF: > { %s460_s3 = sand.u32 1, %s781_s9   ;;  %p592_p0 = pnand %p554_p12, %p880_p11 }
 0x136   : > { %s461_s27 = scalar_lea.sflag [#allocation5], %s460_s3 }
 0x137   : > { %p593_p1 = pneg %p592_p0 }
 0x139   : > { %776 = dma.done.wait (%p593_p1), %s461_s27, 16  }
 0x13a   : > { %778 = vsyncadd (%p593_p1), %s461_s27, 4294967280  ;;  %s21_s14 = sadd.s32 1, %s801_s14   ;;  %s972_s9 = smov %s785_s10 }
 0x13b   : > { %p18_p2 = scmp.ge.s32.totalorder %s21_s14, 4   ;;  %s973_s10 = smov %s789_s11 }
 0x13c   : > { %s974_s11 = smov %s878_s23  ;;  %s975_s12 = smov %s797_s13 }
 0x13d   : > { %s976_s13 = smov %s978_s17  ;;  %20 = sbr.rel (!%p18_p2) target bundleno = 8 (0x8), region = 98 }
 0x142   :  { %466 = vsyncpa [#allocation4], 1 }
 0x143   :  { %468 = vsyncpa [#allocation4 + $0x1], 1 }
 0x144   :  { %469 = vsyncpa [#allocation7], 1 }
 0x145   :  { %471 = vsyncpa [#allocation7 + $0x1], 1 }
 0x146   :  { %472 = vsyncpa [#allocation5], 1 }
 0x147   :  { %474 = vsyncpa [#allocation5 + $0x1], 1 }

</bundles_post_ra>
